<compile_context>
chip_gen: v7x
topology: tpu7x:2x2x1
jax: 0.10.0
libtpu: 0.0.40
codegen_flags: <defaults>
</compile_context>

<pallas_src>
import functools

import numpy as np
import jax
import jax.numpy as jnp
from jax.experimental import pallas as pl
from jax.experimental.pallas import tpu as pltpu


def _round_up(x, m):
    return ((x + m - 1) // m) * m


# ----------------------------------------------------------------------------
# Pallas kernel: tiled matmul, bf16 operands, f32 accumulation, fused bias
# ----------------------------------------------------------------------------

def _matmul_bias_kernel(a_ref, b_ref, bias_ref, o_ref, acc_ref):
    k = pl.program_id(2)

    @pl.when(k == 0)
    def _():
        acc_ref[...] = jnp.zeros_like(acc_ref)

    acc_ref[...] += jnp.dot(a_ref[...], b_ref[...],
                            preferred_element_type=jnp.float32)

    @pl.when(k == pl.num_programs(2) - 1)
    def _():
        o_ref[...] = (acc_ref[...] + bias_ref[...]).astype(o_ref.dtype)


def matmul_bias_pallas(a, b, bias=None):
    """C[m,n] = sum_k A[m,k] B[k,n] + bias[n].  Operands cast to bf16 for the MXU."""
    M, K = a.shape
    K2, N = b.shape
    assert K == K2
    if bias is None:
        bias = jnp.zeros((N,), jnp.float32)
    bias = bias.reshape(1, N).astype(jnp.float32)

    # Largest aligned tiles, capped at 512 so the double-buffered footprint
    # (~5 MiB with bf16 inputs + f32 acc/out) is safe on every generation,
    # including v7x's 64 MiB VMEM / 32 MiB default scoped limit.
    tm = min(512, _round_up(M, 8))
    tn = min(512, _round_up(N, 128))
    tk = min(512, _round_up(K, 128))
    Mp, Kp, Np = _round_up(M, tm), _round_up(K, tk), _round_up(N, tn)

    def pad2(x, rows, cols):
        return jnp.pad(x, ((0, rows - x.shape[0]), (0, cols - x.shape[1])))

    a_p = pad2(a, Mp, Kp).astype(jnp.bfloat16)
    b_p = pad2(b, Kp, Np).astype(jnp.bfloat16)
    bias_p = pad2(bias, 1, Np)

    grid = (Mp // tm, Np // tn, Kp // tk)
    out = pl.pallas_call(
        _matmul_bias_kernel,
        out_shape=jax.ShapeDtypeStruct((Mp, Np), jnp.float32),
        grid_spec=pltpu.PrefetchScalarGridSpec(
            num_scalar_prefetch=0,
            grid=grid,
            in_specs=[
                pl.BlockSpec((tm, tk), lambda i, j, k: (i, k)),
                pl.BlockSpec((tk, tn), lambda i, j, k: (k, j)),
                pl.BlockSpec((1, tn), lambda i, j, k: (0, j)),
            ],
            out_specs=pl.BlockSpec((tm, tn), lambda i, j, k: (i, j)),
            scratch_shapes=[pltpu.VMEM((tm, tn), jnp.float32)],
        ),
        compiler_params=pltpu.CompilerParams(
            dimension_semantics=("parallel", "parallel", "arbitrary")),
    )(a_p, b_p, bias_p)
    return out[:M, :N]


# ----------------------------------------------------------------------------
# Depthwise ConvTranspose2d via phase decomposition (no dense scatter matrix)
# ----------------------------------------------------------------------------

def conv_transpose_depthwise(x_nhwc, w_ckk, stride):
    """ConvTranspose2d(C, C, k, stride=s, padding=0, groups=C, bias=False).

    Phase decomposition: with T = ceil(k/s), output pixel (qh*s+rh, qw*s+rw)
    depends on at most T*T input pixels, so the op becomes a single
    (N*QH*QW, T*T*C) @ (T*T*C, s*s*C) Pallas matmul, followed by one XLA
    reshape/transpose that interleaves the s*s phases back into space.
    """
    N, IH, IW, C = x_nhwc.shape
    Cw, k, k2 = w_ckk.shape
    assert Cw == C and k == k2
    s = int(stride)
    T = -(-k // s)                       # taps per phase per axis
    OH = (IH - 1) * s + k
    OW = (IW - 1) * s + k
    QH = IH + T - 1
    QW = IW + T - 1
    S2, T2 = s * s, T * T

    # T*T shifted, zero-padded copies of the (small) pre-upsample tensor.
    shifts = []
    for dh in range(T):
        for dw in range(T):
            shifts.append(jnp.pad(
                x_nhwc, ((0, 0), (dh, T - 1 - dh), (dw, T - 1 - dw), (0, 0))))
    xs2 = jnp.stack(shifts, axis=3).reshape(N * QH * QW, T2 * C)

    # Tap table: W[t*C + c', (rh*s+rw)*C + c] = delta(c,c') * w[c, rh+dh*s, rw+dw*s]
    kh = np.arange(s)[:, None] + np.arange(T)[None, :] * s          # [rh, dh]
    kw = np.arange(s)[:, None] + np.arange(T)[None, :] * s          # [rw, dw]
    valid = (kh < k).reshape(s, T, 1, 1, 1) & (kw < k).reshape(1, 1, s, T, 1)
    wt = jnp.transpose(w_ckk, (1, 2, 0))                            # (k, k, C)
    g = wt[np.minimum(kh, k - 1).reshape(-1)]                       # (s*T, k, C)
    g = g[:, np.minimum(kw, k - 1).reshape(-1)]                     # (s*T, s*T, C)
    g = g.reshape(s, T, s, T, C)                                    # [rh,dh,rw,dw,c]
    g = jnp.where(valid, g, 0.0)
    fphase = jnp.transpose(g, (1, 3, 0, 2, 4)).reshape(T2, S2, C)   # [t, p, c]
    wmat = (fphase[:, None, :, :] *
            jnp.eye(C, dtype=jnp.float32)[None, :, None, :]).reshape(T2 * C, S2 * C)

    out2d = matmul_bias_pallas(xs2, wmat)                           # (N*QH*QW, s*s*C)

    # Interleave the s*s phases back into the spatial grid (single XLA pass).
    # TODO(synk): a strided-write output BlockSpec cannot express this
    # interleave, so it remains one reshape/transpose outside the kernel.
    out = out2d.reshape(N, QH, QW, s, s, C)
    out = jnp.transpose(out, (0, 1, 3, 2, 4, 5)).reshape(N, QH * s, QW * s, C)
    return out[:, :OH, :OW, :]


# ----------------------------------------------------------------------------
# Res5OutputCrop forward
# ----------------------------------------------------------------------------

def res5_output_crop_forward(params, res_nchw, reference_nchw, *,
                             kernel_sz=16, stride=8, do_crops=True):
    x = jnp.transpose(res_nchw, (0, 2, 3, 1)).astype(jnp.float32)   # NHWC
    N, H, W, Cin = x.shape
    nclasses = params["conv_w"].shape[0]

    # 1x1 conv + bias  (Pallas MXU matmul, lane-dense padded output)
    a = x.reshape(N * H * W, Cin)
    wm = params["conv_w"].reshape(nclasses, Cin).T                  # (Cin, nclasses)
    y = matmul_bias_pallas(a, wm, params["conv_b"]).reshape(N, H, W, nclasses)

    # depthwise transposed-conv upsampler
    up = conv_transpose_depthwise(y, params["up_w"], stride=stride)

    # Crop(axis=2, offset=kernel_sz//4): crop H and W to the reference's size.
    if do_crops:
        off = kernel_sz // 4
        rh = reference_nchw.shape[2]
        rw = reference_nchw.shape[3]
        up = up[:, off:off + rh, off:off + rw, :]

    return jnp.transpose(up, (0, 3, 1, 2))                          # back to NCHW


# ----------------------------------------------------------------------------
# Pure numpy/XLA reference (mirrors the bf16 operand rounding of the MXU path)
# ----------------------------------------------------------------------------

def _reference_forward(params, res, reference, kernel_sz, stride, do_crops=True):
    def r16(v):
        return np.asarray(jnp.asarray(v).astype(jnp.bfloat16).astype(jnp.float32))

    x = np.transpose(np.asarray(res, np.float32), (0, 2, 3, 1))
    nclasses, cin = params["conv_w"].shape[:2]
    y = np.einsum("nhwc,oc->nhwo", r16(x),
                  r16(params["conv_w"]).reshape(nclasses, cin))
    y = y + np.asarray(params["conv_b"], np.float32)

    yr, wr = r16(y), r16(params["up_w"])
    N, IH, IW, C = yr.shape
    k, s = kernel_sz, stride
    out = np.zeros((N, (IH - 1) * s + k, (IW - 1) * s + k, C), np.float32)
    wt = np.transpose(wr, (1, 2, 0))[None]                          # (1, k, k, C)
    for ih in range(IH):
        for iw in range(IW):
            out[:, ih * s:ih * s + k, iw * s:iw * s + k, :] += (
                yr[:, ih, iw, None, None, :] * wt)
    if do_crops:
        off = k // 4
        rh, rw = reference.shape[2], reference.shape[3]
        out = out[:, off:off + rh, off:off + rw, :]
    return np.transpose(out, (0, 3, 1, 2))


# ----------------------------------------------------------------------------

if __name__ == "__main__":
    nclasses = 4
    in_channels = 256          # module default is 2048; kept small for the smoke test
    kernel_sz, stride = 16, 8
    N, Hr, Wr = 2, 4, 4
    ref_hw = Hr * stride       # reference ("data in") spatial size = 32

    root = jax.random.PRNGKey(0)
    k1, k2, k3, k4, k5 = jax.random.split(root, 5)
    params = {
        "conv_w": 0.01 * jax.random.normal(k1, (nclasses, in_channels, 1, 1),
                                           jnp.float32),
        "conv_b": 0.1 * jax.random.normal(k2, (nclasses,), jnp.float32),
        # In resnet_casenet101.py this weight is set to a bilinear filter; the
        # forward is identical for any values, so random values exercise it fully.
        "up_w": 0.1 * jax.random.normal(k3, (nclasses, kernel_sz, kernel_sz),
                                        jnp.float32),
    }
    res = jax.random.normal(k4, (N, in_channels, Hr, Wr), jnp.float32)
    reference = jax.random.normal(k5, (N, 3, ref_hw, ref_hw), jnp.float32)

    fwd = jax.jit(functools.partial(res5_output_crop_forward,
                                    kernel_sz=kernel_sz, stride=stride,
                                    do_crops=True))
    out = fwd(params, res, reference)
    jax.block_until_ready(out)

    assert out.shape == (N, nclasses, ref_hw, ref_hw), out.shape
    assert bool(jnp.all(jnp.isfinite(out)))

    ref_out = _reference_forward(params, res, reference, kernel_sz, stride)
    max_err = float(np.max(np.abs(np.asarray(out) - ref_out)))
    assert np.allclose(np.asarray(out), ref_out, rtol=1e-2, atol=1e-2), max_err

    print("KERNEL_OK")
</pallas_src>

<mosaic_0001>
module attributes {stable_mosaic.version = 11 : i64} {
  func.func @_matmul_bias_kernel(%arg0: i32, %arg1: i32, %arg2: i32, %arg3: memref<32x256xbf16, #tpu.memory_space<vmem>>, %arg4: memref<256x128xbf16, #tpu.memory_space<vmem>>, %arg5: memref<1x128xf32, #tpu.memory_space<vmem>>, %arg6: memref<32x128xf32, #tpu.memory_space<vmem>>, %arg7: memref<32x128xf32, #tpu.memory_space<vmem>>) attributes {dimension_semantics = [#tpu.dimension_semantics<parallel>, #tpu.dimension_semantics<parallel>, #tpu.dimension_semantics<arbitrary>], iteration_bounds = array<i64: 1, 1, 1>, scalar_prefetch = 0 : i64, scratch_operands = 1 : i64, tpu.core_type = #tpu.core_type<tc>, window_params = [{transform_indices = @transform_0, window_bounds = array<i64: 32, 256>}, {transform_indices = @transform_1, window_bounds = array<i64: 256, 128>}, {transform_indices = @transform_2, window_bounds = array<i64: 1, 128>}, {transform_indices = @transform_3, window_bounds = array<i64: 32, 128>}]} {
    %c0_i32 = arith.constant 0 : i32
    %0 = arith.cmpi eq, %arg2, %c0_i32 : i32
    %1 = arith.extui %0 : i1 to i32
    %c0_i32_0 = arith.constant 0 : i32
    %2 = arith.cmpi ne, %1, %c0_i32_0 : i32
    scf.if %2 {
      %cst_10 = arith.constant 0.000000e+00 : f32
      %12 = vector.broadcast %cst_10 : f32 to vector<32x128xf32>
      %c0_11 = arith.constant 0 : index
      %c0_12 = arith.constant 0 : index
      %13 = vector.load %arg7[%c0_11, %c0_12] : memref<32x128xf32, #tpu.memory_space<vmem>>, vector<32x128xf32>
      tpu.vector_store %arg7[%c0_11, %c0_12], %12 {strides = array<i32>} : memref<32x128xf32, #tpu.memory_space<vmem>>, vector<32x128xf32>,
    } else {
    }
    %c0 = arith.constant 0 : index
    %c0_1 = arith.constant 0 : index
    %3 = vector.load %arg7[%c0, %c0_1] : memref<32x128xf32, #tpu.memory_space<vmem>>, vector<32x128xf32>
    %c0_2 = arith.constant 0 : index
    %c0_3 = arith.constant 0 : index
    %4 = vector.load %arg3[%c0_2, %c0_3] : memref<32x256xbf16, #tpu.memory_space<vmem>>, vector<32x256xbf16>
    %c0_4 = arith.constant 0 : index
    %c0_5 = arith.constant 0 : index
    %5 = vector.load %arg4[%c0_4, %c0_5] : memref<256x128xbf16, #tpu.memory_space<vmem>>, vector<256x128xbf16>
    %cst = arith.constant dense<0.000000e+00> : vector<32x128xf32>
    %6 = tpu.matmul %4, %5, %cst {dimension_numbers = #tpu.dot_dimension_numbers<[1], [0], [0], [1], [0, 0, 1, 1], [], []>} : vector<32x256xbf16>, vector<256x128xbf16>, vector<32x128xf32> -> vector<32x128xf32>
    %7 = arith.addf %3, %6 : vector<32x128xf32>
    %c0_6 = arith.constant 0 : index
    %c0_7 = arith.constant 0 : index
    %8 = vector.load %arg7[%c0_6, %c0_7] : memref<32x128xf32, #tpu.memory_space<vmem>>, vector<32x128xf32>
    tpu.vector_store %arg7[%c0_6, %c0_7], %7 {strides = array<i32>} : memref<32x128xf32, #tpu.memory_space<vmem>>, vector<32x128xf32>,
    %c0_i32_8 = arith.constant 0 : i32
    %9 = arith.cmpi eq, %arg2, %c0_i32_8 : i32
    %10 = arith.extui %9 : i1 to i32
    %c0_i32_9 = arith.constant 0 : i32
    %11 = arith.cmpi ne, %10, %c0_i32_9 : i32
    scf.if %11 {
      %c0_10 = arith.constant 0 : index
      %c0_11 = arith.constant 0 : index
      %12 = vector.load %arg7[%c0_10, %c0_11] : memref<32x128xf32, #tpu.memory_space<vmem>>, vector<32x128xf32>
      %c0_12 = arith.constant 0 : index
      %c0_13 = arith.constant 0 : index
      %13 = vector.load %arg5[%c0_12, %c0_13] : memref<1x128xf32, #tpu.memory_space<vmem>>, vector<1x128xf32>
      %14 = vector.broadcast %13 : vector<1x128xf32> to vector<32x128xf32>
      %15 = arith.addf %12, %14 : vector<32x128xf32>
      %c0_14 = arith.constant 0 : index
      %c0_15 = arith.constant 0 : index
      %16 = vector.load %arg6[%c0_14, %c0_15] : memref<32x128xf32, #tpu.memory_space<vmem>>, vector<32x128xf32>
      tpu.vector_store %arg6[%c0_14, %c0_15], %15 {strides = array<i32>} : memref<32x128xf32, #tpu.memory_space<vmem>>, vector<32x128xf32>,
    } else {
    }
    return
  }
  func.func @transform_0(%arg0: i32, %arg1: i32, %arg2: i32) -> (i32, i32) {
    %c0_i32 = arith.constant 0 : i32
    return %arg0, %arg2 : i32, i32
  }
  func.func @transform_1(%arg0: i32, %arg1: i32, %arg2: i32) -> (i32, i32) {
    %c0_i32 = arith.constant 0 : i32
    return %arg2, %arg1 : i32, i32
  }
  func.func @transform_2(%arg0: i32, %arg1: i32, %arg2: i32) -> (i32, i32) {
    %c0_i32 = arith.constant 0 : i32
    %c0_i32_0 = arith.constant 0 : i32
    return %c0_i32, %arg1 : i32, i32
  }
  func.func @transform_3(%arg0: i32, %arg1: i32, %arg2: i32) -> (i32, i32) {
    %c0_i32 = arith.constant 0 : i32
    return %arg0, %arg1 : i32, i32
  }
}

module attributes {stable_mosaic.version = 11 : i64} {
  func.func @_matmul_bias_kernel(%arg0: i32, %arg1: i32, %arg2: i32, %arg3: memref<56x128xbf16, #tpu.memory_space<vmem>>, %arg4: memref<128x256xbf16, #tpu.memory_space<vmem>>, %arg5: memref<1x256xf32, #tpu.memory_space<vmem>>, %arg6: memref<56x256xf32, #tpu.memory_space<vmem>>, %arg7: memref<56x256xf32, #tpu.memory_space<vmem>>) attributes {dimension_semantics = [#tpu.dimension_semantics<parallel>, #tpu.dimension_semantics<parallel>, #tpu.dimension_semantics<arbitrary>], iteration_bounds = array<i64: 1, 1, 1>, scalar_prefetch = 0 : i64, scratch_operands = 1 : i64, tpu.core_type = #tpu.core_type<tc>, window_params = [{transform_indices = @transform_0, window_bounds = array<i64: 56, 128>}, {transform_indices = @transform_1, window_bounds = array<i64: 128, 256>}, {transform_indices = @transform_2, window_bounds = array<i64: 1, 256>}, {transform_indices = @transform_3, window_bounds = array<i64: 56, 256>}]} {
    %c0_i32 = arith.constant 0 : i32
    %0 = arith.cmpi eq, %arg2, %c0_i32 : i32
    %1 = arith.extui %0 : i1 to i32
    %c0_i32_0 = arith.constant 0 : i32
    %2 = arith.cmpi ne, %1, %c0_i32_0 : i32
    scf.if %2 {
      %cst_10 = arith.constant 0.000000e+00 : f32
      %12 = vector.broadcast %cst_10 : f32 to vector<56x256xf32>
      %c0_11 = arith.constant 0 : index
      %c0_12 = arith.constant 0 : index
      %13 = vector.load %arg7[%c0_11, %c0_12] : memref<56x256xf32, #tpu.memory_space<vmem>>, vector<56x256xf32>
      tpu.vector_store %arg7[%c0_11, %c0_12], %12 {strides = array<i32>} : memref<56x256xf32, #tpu.memory_space<vmem>>, vector<56x256xf32>,
    } else {
    }
    %c0 = arith.constant 0 : index
    %c0_1 = arith.constant 0 : index
    %3 = vector.load %arg7[%c0, %c0_1] : memref<56x256xf32, #tpu.memory_space<vmem>>, vector<56x256xf32>
    %c0_2 = arith.constant 0 : index
    %c0_3 = arith.constant 0 : index
    %4 = vector.load %arg3[%c0_2, %c0_3] : memref<56x128xbf16, #tpu.memory_space<vmem>>, vector<56x128xbf16>
    %c0_4 = arith.constant 0 : index
    %c0_5 = arith.constant 0 : index
    %5 = vector.load %arg4[%c0_4, %c0_5] : memref<128x256xbf16, #tpu.memory_space<vmem>>, vector<128x256xbf16>
    %cst = arith.constant dense<0.000000e+00> : vector<56x256xf32>
    %6 = tpu.matmul %4, %5, %cst {dimension_numbers = #tpu.dot_dimension_numbers<[1], [0], [0], [1], [0, 0, 1, 1], [], []>} : vector<56x128xbf16>, vector<128x256xbf16>, vector<56x256xf32> -> vector<56x256xf32>
    %7 = arith.addf %3, %6 : vector<56x256xf32>
    %c0_6 = arith.constant 0 : index
    %c0_7 = arith.constant 0 : index
    %8 = vector.load %arg7[%c0_6, %c0_7] : memref<56x256xf32, #tpu.memory_space<vmem>>, vector<56x256xf32>
    tpu.vector_store %arg7[%c0_6, %c0_7], %7 {strides = array<i32>} : memref<56x256xf32, #tpu.memory_space<vmem>>, vector<56x256xf32>,
    %c0_i32_8 = arith.constant 0 : i32
    %9 = arith.cmpi eq, %arg2, %c0_i32_8 : i32
    %10 = arith.extui %9 : i1 to i32
    %c0_i32_9 = arith.constant 0 : i32
    %11 = arith.cmpi ne, %10, %c0_i32_9 : i32
    scf.if %11 {
      %c0_10 = arith.constant 0 : index
      %c0_11 = arith.constant 0 : index
      %12 = vector.load %arg7[%c0_10, %c0_11] : memref<56x256xf32, #tpu.memory_space<vmem>>, vector<56x256xf32>
      %c0_12 = arith.constant 0 : index
      %c0_13 = arith.constant 0 : index
      %13 = vector.load %arg5[%c0_12, %c0_13] : memref<1x256xf32, #tpu.memory_space<vmem>>, vector<1x256xf32>
      %14 = vector.broadcast %13 : vector<1x256xf32> to vector<56x256xf32>
      %15 = arith.addf %12, %14 : vector<56x256xf32>
      %c0_14 = arith.constant 0 : index
      %c0_15 = arith.constant 0 : index
      %16 = vector.load %arg6[%c0_14, %c0_15] : memref<56x256xf32, #tpu.memory_space<vmem>>, vector<56x256xf32>
      tpu.vector_store %arg6[%c0_14, %c0_15], %15 {strides = array<i32>} : memref<56x256xf32, #tpu.memory_space<vmem>>, vector<56x256xf32>,
    } else {
    }
    return
  }
  func.func @transform_0(%arg0: i32, %arg1: i32, %arg2: i32) -> (i32, i32) {
    %c0_i32 = arith.constant 0 : i32
    return %arg0, %arg2 : i32, i32
  }
  func.func @transform_1(%arg0: i32, %arg1: i32, %arg2: i32) -> (i32, i32) {
    %c0_i32 = arith.constant 0 : i32
    return %arg2, %arg1 : i32, i32
  }
  func.func @transform_2(%arg0: i32, %arg1: i32, %arg2: i32) -> (i32, i32) {
    %c0_i32 = arith.constant 0 : i32
    %c0_i32_0 = arith.constant 0 : i32
    return %c0_i32, %arg1 : i32, i32
  }
  func.func @transform_3(%arg0: i32, %arg1: i32, %arg2: i32) -> (i32, i32) {
    %c0_i32 = arith.constant 0 : i32
    return %arg0, %arg1 : i32, i32
  }
}

</mosaic_0001>

<bundles_post_ra>
// kernel: res5_output_crop_forward.2
= control target key start
LH: loop header
LB: loop body
LE: loop exit
PB: predicated region body
PF: predicated region fallthrough
CT: control target
= control target key end

     0   :  { %s444_s1 = inlined_call_operand.vmem [shape: bf16[256,128], index: 1, kind: input, shape index: {}]   ;;  %s445_s0 = inlined_call_operand.vmem [shape: bf16[32,256], index: 0, kind: input, shape index: {}]   ;;  %s446_s2 = inlined_call_operand.vmem [shape: f32[1,128], index: 2, kind: input, shape index: {}]   ;;  %s447_s3 = inlined_call_operand.vmem [shape: f32[32,128], index: 3, kind: output, shape index: {}]  }
   0x1   :  { %v327_v0 = vld [vmem:[%s444_s1 + $0x40] sm:$0xff]   ;;  %v329_v2 = vld [vmem:[%s444_s1 + $0x48] sm:$0xff]   ;;  %v331_v4 = vld [vmem:[%s444_s1 + $0x50] sm:$0xff]  }
   0x2   :  { %v328_v1 = vld [vmem:[%s444_s1] sm:$0xff]   ;;  %283 = vmatprep.subr.bf16.mxu0 %v327_v0  ;;  %311 = vmatprep.subr.bf16.mxu1 %v327_v0  ;;  %v330_v3 = vld [vmem:[%s444_s1 + $0x8] sm:$0xff]   ;;  %v332_v5 = vld [vmem:[%s444_s1 + $0x10] sm:$0xff]  }
   0x3   :  { %284 = vmatpush3.bf16.msra.mxu0 %v328_v1  ;;  %319 = vmatpush3.bf16.msra.mxu1 %v328_v1  ;;  %v333_v6 = vld [vmem:[%s444_s1 + $0x58] sm:$0xff]   ;;  %v335_v8 = vld [vmem:[%s444_s1 + $0x60] sm:$0xff]   ;;  %v337_v10 = vld [vmem:[%s444_s1 + $0x68] sm:$0xff]  }
   0x4   :  { %285 = vmatprep.subr.bf16.mxu0 %v329_v2  ;;  %312 = vmatprep.subr.bf16.mxu1 %v329_v2  ;;  %v334_v7 = vld [vmem:[%s444_s1 + $0x18] sm:$0xff]   ;;  %v336_v9 = vld [vmem:[%s444_s1 + $0x20] sm:$0xff]   ;;  %v338_v13 = vld [vmem:[%s444_s1 + $0x28] sm:$0xff]  }
   0x5   :  { %v345_v11 = vld [vmem:[%s445_s0 + $0x4] ss:$8 sps:$4 sm:$0xff]   ;;  %v348_v12 = vld [vmem:[%s445_s0 + $0x14] ss:$8 sps:$4 sm:$0xff]   ;;  %v343_v18 = vld [vmem:[%s445_s0] ss:$8 sps:$4 sm:$0xff]  }
   0x6   :  { %v339_v14 = vld [vmem:[%s444_s1 + $0x70] sm:$0xff]   ;;  %211 = vmatprep.mubr.bf16.mxu0 %v345_v11  ;;  %219 = vmatprep.mubr.bf16.mxu1 %v348_v12  ;;  %v341_v16 = vld [vmem:[%s444_s1 + $0x78] sm:$0xff]   ;;  %v282_v23 = vld [vmem:[%s446_s2] ss:$0 sm:$0xff] }
   0x7   :  { %286 = vmatpush3.bf16.msra.mxu0 %v330_v3  ;;  %320 = vmatpush3.bf16.msra.mxu1 %v330_v3  ;;  %v340_v15 = vld [vmem:[%s444_s1 + $0x30] sm:$0xff]   ;;  %v342_v17 = vld [vmem:[%s444_s1 + $0x38] sm:$0xff]  }
   0x8   :  { %287 = vmatprep.subr.bf16.mxu0 %v331_v4  ;;  %313 = vmatprep.subr.bf16.mxu1 %v331_v4  ;;  %v346_v19 = vld [vmem:[%s445_s0 + $0x10] ss:$8 sps:$4 sm:$0xff]  }
   0xb   :  { %288 = vmatpush3.bf16.msra.mxu0 %v332_v5  ;;  %321 = vmatpush3.bf16.msra.mxu1 %v332_v5 }
   0xc   :  { %289 = vmatprep.subr.bf16.mxu0 %v333_v6  ;;  %314 = vmatprep.subr.bf16.mxu1 %v333_v6 }
   0xf   :  { %290 = vmatpush3.bf16.msra.mxu0 %v334_v7  ;;  %322 = vmatpush3.bf16.msra.mxu1 %v334_v7 }
  0x10   :  { %291 = vmatprep.subr.bf16.mxu0 %v335_v8  ;;  %315 = vmatprep.subr.bf16.mxu1 %v335_v8 }
  0x13   :  { %292 = vmatpush3.bf16.msra.mxu0 %v336_v9  ;;  %323 = vmatpush3.bf16.msra.mxu1 %v336_v9 }
  0x14   :  { %293 = vmatprep.subr.bf16.mxu0 %v337_v10  ;;  %316 = vmatprep.subr.bf16.mxu1 %v337_v10 }
  0x17   :  { %294 = vmatpush3.bf16.msra.mxu0 %v338_v13  ;;  %324 = vmatpush3.bf16.msra.mxu1 %v338_v13 }
  0x18   :  { %295 = vmatprep.subr.bf16.mxu0 %v339_v14  ;;  %317 = vmatprep.subr.bf16.mxu1 %v339_v14 }
  0x1b   :  { %296 = vmatpush3.bf16.msra.mxu0 %v340_v15  ;;  %325 = vmatpush3.bf16.msra.mxu1 %v340_v15 }
  0x1c   :  { %297 = vmatprep.subr.bf16.mxu0 %v341_v16  ;;  %318 = vmatprep.subr.bf16.mxu1 %v341_v16 }
  0x1f   :  { %298 = vmatpush3.bf16.msra.mxu0 %v342_v17  ;;  %326 = vmatpush3.bf16.msra.mxu1 %v342_v17 }
  0x22   :  { %212 = vmatmul.mubr.bf16.vlgmr.msra.gmra.mrb[0].mxu0 %v343_v18  ;;  %220 = vmatmul.mubr.bf16.vlgmr.msra.gmra.mrb[0].mxu1 %v346_v19 }
  0xf5   :  { %v299_v20 = vpop.f32.mrb[0].mxu0  ;;  %v305_v21 = vpop.f32.mrb[0].mxu1 }
  0xf6   :  { %v300_v22 = vpop.f32.mrb[1].mxu0  ;;  %v306_v24 = vpop.f32.mrb[1].mxu1 }
  0xf7   :  { %v301_v25 = vadd.f32 %v300_v22, %v299_v20  ;;  %v307_v26 = vadd.f32 %v306_v24, %v305_v21  ;;  %v302_v27 = vpop.f32.mrb[2].mxu0  ;;  %v308_v28 = vpop.f32.mrb[2].mxu1 }
  0xf8   :  { %v303_v29 = vpop.f32.mrb[3].mxu0  ;;  %v309_v30 = vpop.f32.mrb[3].mxu1 }
  0xf9   :  { %v250_v31 = vadd.f32 %v301_v25, %v282_v23  ;;  %v252_v32 = vadd.f32 %v307_v26, %v282_v23  ;;  %v304_v33 = vadd.f32 %v303_v29, %v302_v27  ;;  %v310_v34 = vadd.f32 %v309_v30, %v308_v28 }
  0xfb   :  { %254 = vst [vmem:[%s447_s3] sm:$0xff] %v250_v31  ;;  %256 = vst [vmem:[%s447_s3 + $0x10] sm:$0xff] %v252_v32  ;;  %v251_v35 = vadd.f32 %v304_v33, %v282_v23  ;;  %v253_v36 = vadd.f32 %v310_v34, %v282_v23 }
  0xfd   :  { %255 = vst [vmem:[%s447_s3 + $0x8] sm:$0xff] %v251_v35  ;;  %257 = vst [vmem:[%s447_s3 + $0x18] sm:$0xff] %v253_v36 }

// kernel: res5_output_crop_forward.3
= control target key start
LH: loop header
LB: loop body
LE: loop exit
PB: predicated region body
PF: predicated region fallthrough
CT: control target
= control target key end

     0   :  { %v397_v1 = vmov 0   ;;  %v290_v21 = vlaneseq  ;;  %s523_s1 = inlined_call_operand.vmem [shape: bf16[128,256], index: 1, kind: input, shape index: {}]   ;;  %s524_s0 = inlined_call_operand.vmem [shape: bf16[56,128], index: 0, kind: input, shape index: {}]   ;;  %s525_s2 = inlined_call_operand.vmem [shape: f32[1,256], index: 2, kind: input, shape index: {}]   ;;  %s526_s3 = inlined_call_operand.vmem [shape: f32[56,256], index: 3, kind: output, shape index: {}]  }
   0x1   :  { %v369_v0 = vld [vmem:[%s523_s1 + $0x4] ss:$8 sps:$4 sm:$0xff]   ;;  %204 = vmatprep.mubr.bf16.mxu0 %v397_v1  ;;  %224 = vmatprep.mubr.bf16.mxu1 %v397_v1  ;;  %v371_v2 = vld [vmem:[%s523_s1] ss:$8 sps:$4 sm:$0xff]   ;;  %v372_v3 = vld [vmem:[%s523_s1 + $0x14] ss:$8 sps:$4 sm:$0xff]  }
   0x2   :  { %172 = vmatprep.subr.bf16.mxu0 %v369_v0  ;;  %352 = vmatprep.subr.bf16.mxu1 %v369_v0  ;;  %v374_v4 = vld [vmem:[%s523_s1 + $0x10] ss:$8 sps:$4 sm:$0xff]   ;;  %v375_v5 = vld [vmem:[%s523_s1 + $0x24] ss:$8 sps:$4 sm:$0xff]   ;;  %v377_v6 = vld [vmem:[%s523_s1 + $0x20] ss:$8 sps:$4 sm:$0xff]  }
   0x3   :  { %173 = vmatpush1.bf16.msra.mxu0 %v371_v2  ;;  %360 = vmatpush1.bf16.msra.mxu1 %v371_v2  ;;  %v378_v7 = vld [vmem:[%s523_s1 + $0x34] ss:$8 sps:$4 sm:$0xff]   ;;  %v380_v8 = vld [vmem:[%s523_s1 + $0x30] ss:$8 sps:$4 sm:$0xff]   ;;  %v381_v9 = vld [vmem:[%s523_s1 + $0x44] ss:$8 sps:$4 sm:$0xff]  }
   0x4   :  { %174 = vmatprep.subr.bf16.mxu0 %v372_v3  ;;  %353 = vmatprep.subr.bf16.mxu1 %v372_v3  ;;  %v383_v10 = vld [vmem:[%s523_s1 + $0x40] ss:$8 sps:$4 sm:$0xff]   ;;  %v384_v11 = vld [vmem:[%s523_s1 + $0x54] ss:$8 sps:$4 sm:$0xff]   ;;  %v386_v12 = vld [vmem:[%s523_s1 + $0x50] ss:$8 sps:$4 sm:$0xff]  }
   0x5   :  { %v387_v13 = vld [vmem:[%s523_s1 + $0x64] ss:$8 sps:$4 sm:$0xff]   ;;  %v389_v14 = vld [vmem:[%s523_s1 + $0x60] ss:$8 sps:$4 sm:$0xff]   ;;  %v390_v15 = vld [vmem:[%s523_s1 + $0x74] ss:$8 sps:$4 sm:$0xff]  }
   0x6   :  { %v392_v16 = vld [vmem:[%s523_s1 + $0x70] ss:$8 sps:$4 sm:$0xff]   ;;  %v393_v17 = vld [vmem:[%s524_s0] sm:$0xff]   ;;  %v395_v19 = vld [vmem:[%s524_s0 + $0x8] sm:$0xff]   ;;  %v291_v22 = vshrl.u32 %v290_v21, 7 }
   0x7   :  { %175 = vmatpush1.bf16.msra.mxu0 %v374_v4  ;;  %361 = vmatpush1.bf16.msra.mxu1 %v374_v4  ;;  %v394_v18 = vld [vmem:[%s524_s0 + $0x10] sm:$0xff]   ;;  %v396_v20 = vld [vmem:[%s524_s0 + $0x18] ss:$0 sps:$4 sm:$0xff]   ;;  %v288_v24 = vld [vmem:[%s525_s2] sm:$0x3] }
   0x8   :  { %176 = vmatprep.subr.bf16.mxu0 %v375_v5  ;;  %354 = vmatprep.subr.bf16.mxu1 %v375_v5  ;;  %v292_v23 = vsub.s32 0, %v291_v22  ;;  %v296_v25 = vsub.s32 1, %v291_v22 }
   0xa   :  { %v293_v26 = vrot.slane %v288_v24, %v292_v23  ;;  %v297_v27 = vrot.slane %v288_v24, %v296_v25 }
   0xb   :  { %177 = vmatpush1.bf16.msra.mxu0 %v377_v6  ;;  %362 = vmatpush1.bf16.msra.mxu1 %v377_v6 }
   0xc   :  { %178 = vmatprep.subr.bf16.mxu0 %v378_v7  ;;  %355 = vmatprep.subr.bf16.mxu1 %v378_v7 }
   0xf   :  { %179 = vmatpush1.bf16.msra.mxu0 %v380_v8  ;;  %363 = vmatpush1.bf16.msra.mxu1 %v380_v8 }
  0x10   :  { %180 = vmatprep.subr.bf16.mxu0 %v381_v9  ;;  %356 = vmatprep.subr.bf16.mxu1 %v381_v9 }
  0x13   :  { %181 = vmatpush1.bf16.msra.mxu0 %v383_v10  ;;  %364 = vmatpush1.bf16.msra.mxu1 %v383_v10 }
  0x14   :  { %182 = vmatprep.subr.bf16.mxu0 %v384_v11  ;;  %357 = vmatprep.subr.bf16.mxu1 %v384_v11 }
  0x17   :  { %183 = vmatpush1.bf16.msra.mxu0 %v386_v12  ;;  %365 = vmatpush1.bf16.msra.mxu1 %v386_v12 }
  0x18   :  { %184 = vmatprep.subr.bf16.mxu0 %v387_v13  ;;  %358 = vmatprep.subr.bf16.mxu1 %v387_v13 }
  0x1b   :  { %185 = vmatpush1.bf16.msra.mxu0 %v389_v14  ;;  %366 = vmatpush1.bf16.msra.mxu1 %v389_v14 }
  0x1c   :  { %186 = vmatprep.subr.bf16.mxu0 %v390_v15  ;;  %359 = vmatprep.subr.bf16.mxu1 %v390_v15 }
  0x1f   :  { %187 = vmatpush1.bf16.msra.mxu0 %v392_v16  ;;  %367 = vmatpush1.bf16.msra.mxu1 %v392_v16 }
  0x22   :  { %205 = vmatmul.mubr.bf16.vlgmr.msra.gmra.mrb[0].mxu0 %v393_v17  ;;  %225 = vmatmul.mubr.bf16.vlgmr.msra.gmra.mrb[0].mxu1 %v394_v18 }
  0x23   :  { %214 = vmatprep.mubr.bf16.mxu0 %v397_v1  ;;  %234 = vmatprep.mubr.bf16.mxu1 %v397_v1 }
  0x2a   :  { %215 = vmatmul.mubr.bf16.gmra.mrb[4].mxu0 %v395_v19  ;;  %235 = vmatmul.mubr.bf16.gmra.mrb[4].mxu1 %v396_v20 }
  0xf5   :  { %v206_v28 = vpop.f32.mrb[0].mxu0  ;;  %v226_v29 = vpop.f32.mrb[0].mxu1 }
  0xf6   :  { %v300_v30 = vadd.f32 %v293_v26, %v206_v28  ;;  %v308_v31 = vadd.f32 %v293_v26, %v226_v29  ;;  %v208_v32 = vpop.f32.mrb[1].mxu0  ;;  %v228_v33 = vpop.f32.mrb[1].mxu1 }
  0xf7   :  { %v301_v34 = vadd.f32 %v297_v27, %v208_v32  ;;  %v309_v35 = vadd.f32 %v297_v27, %v228_v33  ;;  %v210_v36 = vpop.f32.mrb[2].mxu0  ;;  %v230_v37 = vpop.f32.mrb[2].mxu1 }
  0xf8   :  { %314 = vst [vmem:[%s526_s3] sm:$0xff] %v300_v30  ;;  %322 = vst [vmem:[%s526_s3 + $0x40] sm:$0xff] %v308_v31  ;;  %v302_v38 = vadd.f32 %v293_v26, %v210_v36  ;;  %v310_v39 = vadd.f32 %v293_v26, %v230_v37  ;;  %v212_v40 = vpop.f32.mrb[3].mxu0  ;;  %v232_v41 = vpop.f32.mrb[3].mxu1 }
  0xf9   :  { %315 = vst [vmem:[%s526_s3 + $0x8] sm:$0xff] %v301_v34  ;;  %323 = vst [vmem:[%s526_s3 + $0x48] sm:$0xff] %v309_v35  ;;  %v303_v42 = vadd.f32 %v297_v27, %v212_v40  ;;  %v311_v43 = vadd.f32 %v297_v27, %v232_v41 }
  0xfa   :  { %316 = vst [vmem:[%s526_s3 + $0x10] sm:$0xff] %v302_v38  ;;  %324 = vst [vmem:[%s526_s3 + $0x50] sm:$0xff] %v310_v39 }
  0xfb   :  { %317 = vst [vmem:[%s526_s3 + $0x18] sm:$0xff] %v303_v42  ;;  %325 = vst [vmem:[%s526_s3 + $0x58] sm:$0xff] %v311_v43 }
  0xfd   :  { %v216_v44 = vpop.f32.mrb[4].mxu0  ;;  %v236_v45 = vpop.f32.mrb[4].mxu1 }
  0xfe   :  { %v304_v46 = vadd.f32 %v293_v26, %v216_v44  ;;  %v312_v47 = vadd.f32 %v293_v26, %v236_v45  ;;  %v218_v48 = vpop.f32.mrb[5].mxu0  ;;  %v238_v49 = vpop.f32.mrb[5].mxu1 }
  0xff   :  { %v305_v50 = vadd.f32 %v297_v27, %v218_v48  ;;  %v313_v51 = vadd.f32 %v297_v27, %v238_v49  ;;  %v220_v52 = vpop.f32.mrb[6].mxu0  ;;  %v240_v53 = vpop.f32.mrb[6].mxu1 }
 0x100   :  { %318 = vst [vmem:[%s526_s3 + $0x20] sm:$0xff] %v304_v46  ;;  %326 = vst [vmem:[%s526_s3 + $0x60] sm:$0xff] %v312_v47  ;;  %v306_v54 = vadd.f32 %v293_v26, %v220_v52  ;;  %v222_v55 = vpop.f32.mrb[7].mxu0  ;;  %v241_v56 = vpop.f32.mrb[7].mxu1 }
 0x101   :  { %319 = vst [vmem:[%s526_s3 + $0x28] sm:$0xff] %v305_v50  ;;  %327 = vst [vmem:[%s526_s3 + $0x68] sm:$0xff] %v313_v51  ;;  %v307_v57 = vadd.f32 %v297_v27, %v222_v55 }
 0x102   :  { %320 = vst [vmem:[%s526_s3 + $0x30] sm:$0xff] %v306_v54 }
 0x103   :  { %321 = vst [vmem:[%s526_s3 + $0x38] sm:$0xff] %v307_v57 }

</bundles_post_ra>
